<compile_context>
chip_gen: v5e
topology: v5e:2x2
jax: 0.10.0
libtpu: 0.0.40
codegen_flags: <defaults>
</compile_context>

<pallas_src>
import jax
import jax.numpy as jnp
from jax.experimental import pallas as pl
from jax.experimental.pallas import tpu as pltpu


def _round_up(x, m):
    return ((x + m - 1) // m) * m


def skipgram_kernel(u_ref, v_ref, o_ref):
    # u_ref, v_ref: (TILE_B, D) tiles -- batch on sublanes, emb_dim on lanes.
    # o_ref:        (TILE_B, 1) per-row dot product.
    prod = u_ref[...] * v_ref[...]
    o_ref[...] = jnp.sum(prod, axis=-1, keepdims=True)


def _vmem_capacity_bytes():
    try:
        return int(pltpu.get_tpu_info().vmem_capacity_bytes)
    except Exception:
        return 64 << 20  # conservative (v7x-sized) fallback


def _dimension_semantics():
    # CORE_PARALLEL on v7x (2 TensorCores/chip) so the batch-tile axis is
    # actually sharded across cores; plain "parallel" elsewhere.
    try:
        kind = jax.devices()[0].device_kind.lower().replace(" ", "")
    except Exception:
        kind = ""
    if ("v7" in kind or "7x" in kind) and hasattr(pltpu, "CORE_PARALLEL"):
        return (pltpu.CORE_PARALLEL,)
    return ("parallel",)


def skipgram_forward(u_weight, v_weight, u_idxs, v_idxs, *, max_tile_b=4096):
    """Pallas implementation of SkipGram.forward.

    u_weight, v_weight: (vocab_size, emb_dim) float32 embedding tables
    u_idxs, v_idxs:     (B,) int32 token indices
    returns:            (B,) float32  score = sum(u_emb * v_emb, axis=-1)
    """
    B = u_idxs.shape[0]
    vocab_size, emb_dim = u_weight.shape

    # One large XLA gather per table; (B, emb_dim) is already the layout the
    # kernel wants -- no transpose, no pad.
    u_emb = jnp.take(u_weight, u_idxs, axis=0).astype(jnp.float32)
    v_emb = jnp.take(v_weight, v_idxs, axis=0).astype(jnp.float32)

    # --- Tile sizing: biggest batch tile that keeps the double-buffered
    # inputs within ~1/4 of this generation's VMEM. ---
    vmem_cap = _vmem_capacity_bytes()
    bytes_per_row = 2 * 2 * emb_dim * 4            # 2 inputs x 2 buffers, f32
    tile_b = min(max_tile_b, max(8, (vmem_cap // 4) // bytes_per_row))
    tile_b = min(tile_b, _round_up(B, 8))          # don't exceed the batch
    tile_b = max(8, (tile_b // 8) * 8)             # sublane-aligned

    grid = (pl.cdiv(B, tile_b),)

    # Explicit VMEM limit: what we need plus headroom, never above physical
    # capacity (64 MiB on v7x, 128 MiB on v5e/v6e).
    vmem_needed = 2 * 2 * tile_b * emb_dim * 4 + 2 * tile_b * 4 + (2 << 20)
    vmem_limit = int(min(vmem_cap, max(vmem_needed, 32 << 20)))

    def _call(dim_sem):
        return pl.pallas_call(
            skipgram_kernel,
            out_shape=jax.ShapeDtypeStruct((B, 1), jnp.float32),
            grid_spec=pltpu.PrefetchScalarGridSpec(
                num_scalar_prefetch=0,
                grid=grid,
                in_specs=[
                    pl.BlockSpec((tile_b, emb_dim), lambda i: (i, 0)),
                    pl.BlockSpec((tile_b, emb_dim), lambda i: (i, 0)),
                ],
                out_specs=pl.BlockSpec((tile_b, 1), lambda i: (i, 0)),
            ),
            compiler_params=pltpu.CompilerParams(
                dimension_semantics=dim_sem,
                vmem_limit_bytes=vmem_limit,
            ),
        )(u_emb, v_emb)

    dim_sem = _dimension_semantics()
    try:
        out = _call(dim_sem)
    except Exception:
        if dim_sem == ("parallel",):
            raise
        out = _call(("parallel",))   # safe fallback if CORE_PARALLEL rejects

    return out[:, 0]


def init_params(key, vocab_size, emb_dim):
    """Deterministic init matching nn.Embedding weights + uniform_(-.5/d, .5/d)."""
    k_u, k_v = jax.random.split(key)
    bound = 0.5 / emb_dim
    u_w = jax.random.uniform(k_u, (vocab_size, emb_dim), jnp.float32,
                             minval=-bound, maxval=bound)
    v_w = jax.random.uniform(k_v, (vocab_size, emb_dim), jnp.float32,
                             minval=-bound, maxval=bound)
    return u_w, v_w


if __name__ == "__main__":
    vocab_size = 64
    emb_dim = 128

    key = jax.random.PRNGKey(0)
    k_params, k_idx = jax.random.split(key)
    u_weight, v_weight = init_params(k_params, vocab_size, emb_dim)

    # Check both an aligned batch and a non-multiple-of-8 batch (exercises
    # the masked overhang of the last block).
    for batch in (8, 37):
        k_idx, k_u_idx, k_v_idx = jax.random.split(k_idx, 3)
        u_idxs = jax.random.randint(k_u_idx, (batch,), 0, vocab_size,
                                    dtype=jnp.int32)
        v_idxs = jax.random.randint(k_v_idx, (batch,), 0, vocab_size,
                                    dtype=jnp.int32)

        score = skipgram_forward(u_weight, v_weight, u_idxs, v_idxs)
        score = jax.block_until_ready(score)

        # reference: plain-JAX SkipGram forward
        ref = jnp.sum(u_weight[u_idxs] * v_weight[v_idxs], axis=1)
        assert score.shape == (batch,)
        assert jnp.allclose(score, ref, atol=1e-6, rtol=1e-6), (score, ref)

    print("KERNEL_OK")
</pallas_src>

<mosaic_0001>
module attributes {stable_mosaic.version = 11 : i64} {
  func.func @skipgram_kernel(%arg0: i32, %arg1: memref<8x128xf32, #tpu.memory_space<vmem>>, %arg2: memref<8x128xf32, #tpu.memory_space<vmem>>, %arg3: memref<8x1xf32, #tpu.memory_space<vmem>>) attributes {dimension_semantics = [#tpu.dimension_semantics<parallel>], iteration_bounds = array<i64: 1>, scalar_prefetch = 0 : i64, scratch_operands = 0 : i64, tpu.core_type = #tpu.core_type<tc>, window_params = [{transform_indices = @transform_0, window_bounds = array<i64: 8, 128>}, {transform_indices = @transform_1, window_bounds = array<i64: 8, 128>}, {transform_indices = @transform_2, window_bounds = array<i64: 8, 1>}]} {
    %c0 = arith.constant 0 : index
    %c0_0 = arith.constant 0 : index
    %0 = vector.load %arg1[%c0, %c0_0] : memref<8x128xf32, #tpu.memory_space<vmem>>, vector<8x128xf32>
    %c0_1 = arith.constant 0 : index
    %c0_2 = arith.constant 0 : index
    %1 = vector.load %arg2[%c0_1, %c0_2] : memref<8x128xf32, #tpu.memory_space<vmem>>, vector<8x128xf32>
    %2 = arith.mulf %0, %1 : vector<8x128xf32>
    %cst = arith.constant dense<0.000000e+00> : vector<8xf32>
    %3 = vector.multi_reduction <add>, %2, %cst [1] : vector<8x128xf32> to vector<8xf32>
    %4 = vector.shape_cast %3 : vector<8xf32> to vector<8x1xf32>
    %c0_3 = arith.constant 0 : index
    %c0_4 = arith.constant 0 : index
    %5 = vector.load %arg3[%c0_3, %c0_4] : memref<8x1xf32, #tpu.memory_space<vmem>>, vector<8x1xf32>
    tpu.vector_store %arg3[%c0_3, %c0_4], %4 {strides = array<i32>} : memref<8x1xf32, #tpu.memory_space<vmem>>, vector<8x1xf32>,
    return
  }
  func.func @transform_0(%arg0: i32) -> (i32, i32) {
    %c0_i32 = arith.constant 0 : i32
    %c0_i32_0 = arith.constant 0 : i32
    return %arg0, %c0_i32 : i32, i32
  }
  func.func @transform_1(%arg0: i32) -> (i32, i32) {
    %c0_i32 = arith.constant 0 : i32
    %c0_i32_0 = arith.constant 0 : i32
    return %arg0, %c0_i32 : i32, i32
  }
  func.func @transform_2(%arg0: i32) -> (i32, i32) {
    %c0_i32 = arith.constant 0 : i32
    %c0_i32_0 = arith.constant 0 : i32
    return %arg0, %c0_i32 : i32, i32
  }
}

</mosaic_0001>

<bundles_post_ra>
// kernel: tpu_custom_call.1
= control target key start
LH: loop header
LB: loop body
LE: loop exit
PB: predicated region body
PF: predicated region fallthrough
CT: control target
= control target key end

     0   :  { %7 = vsyncpa [#allocation3], 0  ;;  %s132_s0 = inlined_call_operand.hbm [shape: f32[8,128], index: 0, kind: input, shape index: {}]   ;;  %s133_s1 = inlined_call_operand.hbm [shape: f32[8,128], index: 1, kind: input, shape index: {}]   ;;  %s134_s2 = inlined_call_operand.vmem [shape: f32[8,1], index: 2, kind: output, shape index: {}]  }
   0x1   :  { %s14_s11 = sshll.u32 %s132_s0, 4  ;;  %s15_s11 = int_to_ptr.hbm [resolvable:$true] %s14_s11 }
   0x2   :  { %8 = vsyncpa [#allocation5], 0  ;;  %s106_s12 = smov [#allocation2]   ;;  %s25_s16 = sshll.u32 %s133_s1, 4  ;;  %s26_s16 = int_to_ptr.hbm [resolvable:$true] %s25_s16 }
   0x3   :  { %s16_s13 = sshll.u32 %s106_s12, 4  ;;  %s107_s17 = smov [#allocation4]   ;;  %s17_s13 = int_to_ptr.vmem [resolvable:$true] %s16_s13 }
   0x4   :  { %19 = dma.hbm_to_vmem [thread:$0]  %s15_s11, 128, %s17_s13, [#allocation3]  }
   0x5   :  { %s27_s18 = sshll.u32 %s107_s17, 4  ;;  %s28_s18 = int_to_ptr.vmem [resolvable:$true] %s27_s18 }
   0x6   :  { %30 = dma.hbm_to_vmem [thread:$0]  %s26_s16, 128, %s28_s18, [#allocation5]  }
   0x7   :  { %102 = dma.done.wait [#allocation3], 128  }
   0x8   :  { %103 = vsyncadd [#allocation3], 4294967168 }
   0x9   :  { %104 = dma.done.wait [#allocation5], 128  }
   0xa   :  { %105 = vsyncadd [#allocation5], 4294967168  ;;  %v39_v0 = vld [vmem:[#allocation2] sm:$0xff]  ;;  %v40_v1 = vld [vmem:[#allocation4] sm:$0xff]  ;;  %vm44_vm0 = vcmask 7168  }
   0xb   :  { %v41_v2 = vmul.f32 %v40_v1, %v39_v0 }
   0xd   :  { %42 = vadd.xlane.f32.xlu0 %v41_v2 }
  0x80   :  { %v43_v3 = vpop.xlane.xlu0 %42 }
  0x81   :  { %45 = vst.msk [vmem:[%s134_s2] sm:$0xff] %vm44_vm0, %v43_v3 }
  0x82   :  { %50 = vsyncpa [#allocation3], 1 }
  0x83   :  { %51 = vsyncpa [#allocation5], 1 }

</bundles_post_ra>
